<compile_context>
chip_gen: v6e
topology: v6e:2x2x1
jax: 0.10.0
libtpu: 0.0.40
codegen_flags: <defaults>
</compile_context>

<pallas_src>
import functools

import jax
import jax.numpy as jnp
from jax.experimental import pallas as pl
from jax.experimental.pallas import tpu as pltpu

_NUM_CORES = 2                       # v7x: 2 TCs/chip; harmless serial split on v5e/v6e.
_LANE_TILE_CAP = 32768               # max batch lanes per tile (lane-dense layouts)
_SUBLANE_TILE_CAP = 4096             # max batch rows per tile (row layout, C >= 128)
_VMEM_INPUT_BUDGET = 16 * 1024 * 1024   # double-buffered input working set target
_VMEM_LIMIT = 32 * 1024 * 1024          # explicit scoped-VMEM limit (safe on all gens)


def _cdiv(a, b):
    return -(-a // b)


def _round_down(x, m):
    return x // m * m


def _lane_grid(b, col_bytes, tile_cap):
    """Tile the batch axis on lanes: TB multiple of 128 (or full extent)."""
    tb = _VMEM_INPUT_BUDGET // (2 * col_bytes)
    tb = min(tb, tile_cap)
    tb = max(128, _round_down(tb, 128))
    if b <= tb:
        return b, 1, 1, 1                       # TB, n_tiles, n_cores, steps_per_core
    n_tiles = _cdiv(b, tb)
    nc = min(_NUM_CORES, n_tiles)
    steps = _cdiv(n_tiles, nc)
    return tb, n_tiles, nc, steps


def _sublane_grid(b, row_bytes, itemsizes, tile_cap):
    """Tile the batch axis on sublanes (row layout for C >= 128)."""
    sub = 8 * max(1, 4 // min(itemsizes))       # 8 for f32, 16 for bf16 packing
    tb = _VMEM_INPUT_BUDGET // (2 * row_bytes)
    tb = min(tb, tile_cap)
    tb = max(sub, _round_down(tb, sub))
    if b <= tb:
        return b, 1, 1, 1
    n_tiles = _cdiv(b, tb)
    nc = min(_NUM_CORES, n_tiles)
    steps = _cdiv(n_tiles, nc)
    return tb, n_tiles, nc, steps


def _kd_kl_kernel(inv_t, scale, b_total, tile_b, class_axis, has_weights, *refs):
    """Fused, numerically-stable KL(p_t || p_s) over the class axis.

    class_axis == 0: blocks are (C, TB)  (lane-dense batch)   acc is (1, TB)
    class_axis == 1: blocks are (TB, C)  (row layout)          acc is (TB, 1)
    """
    if has_weights:
        tea_ref, stu_ref, w_ref, out_ref, acc_ref = refs
    else:
        tea_ref, stu_ref, out_ref, acc_ref = refs
    batch_axis = 1 - class_axis

    i = pl.program_id(1)
    steps = pl.num_programs(1)

    @pl.when(i == 0)
    def _init():
        acc_ref[...] = jnp.zeros_like(acc_ref)

    # Global batch offset of this tile (unclamped; index_map clamps the DMA only).
    start = (pl.program_id(0) * steps + i) * tile_b
    pos = start + jax.lax.broadcasted_iota(jnp.int32, tea_ref.shape, batch_axis)
    valid = pos < b_total

    # Mask out-of-range batch entries to a finite value BEFORE exp (garbage-safe).
    t = jnp.where(valid, tea_ref[...].astype(jnp.float32), 0.0) * inv_t
    s = jnp.where(valid, stu_ref[...].astype(jnp.float32), 0.0) * inv_t

    # Teacher: stable softmax pieces.
    t_max = jnp.max(t, axis=class_axis, keepdims=True)
    t_shift = t - t_max
    t_exp = jnp.exp(t_shift)
    t_sum = jnp.sum(t_exp, axis=class_axis, keepdims=True)
    # Student: stable log-sum-exp.
    s_max = jnp.max(s, axis=class_axis, keepdims=True)
    s_shift = s - s_max
    s_lse = jnp.log(jnp.sum(jnp.exp(s_shift), axis=class_axis, keepdims=True))

    # Fused KL row sum: sum_c p_t * (log p_t - log p_s)
    #   = (sum_c t_exp*(t_shift - s_shift)) / t_sum - log(t_sum) + s_lse
    # Masked rows give exactly 0 (uniform || uniform).
    num = jnp.sum(t_exp * (t_shift - s_shift), axis=class_axis, keepdims=True)
    row_kl = num * pl.reciprocal(t_sum, approx=False) - jnp.log(t_sum) + s_lse

    if has_weights:
        pos_w = start + jax.lax.broadcasted_iota(jnp.int32, w_ref.shape, batch_axis)
        w = jnp.where(pos_w < b_total, w_ref[...].astype(jnp.float32), 0.0)
        acc_ref[...] += row_kl * w
    else:
        acc_ref[...] += row_kl

    @pl.when(i == steps - 1)
    def _fin():
        out_ref[...] = jnp.sum(acc_ref[...], keepdims=True) * scale


def _kd_mse_kernel(inv_count, b_total, tile_b, tea_ref, stu_ref, out_ref, acc_ref):
    """MSE over a lane-dense (1, B) slab; blocks are (1, TB)."""
    i = pl.program_id(1)
    steps = pl.num_programs(1)

    @pl.when(i == 0)
    def _init():
        acc_ref[...] = jnp.zeros_like(acc_ref)

    start = (pl.program_id(0) * steps + i) * tile_b
    pos = start + jax.lax.broadcasted_iota(jnp.int32, tea_ref.shape, 1)
    d = jnp.where(pos < b_total,
                  tea_ref[...].astype(jnp.float32) - stu_ref[...].astype(jnp.float32),
                  0.0)
    acc_ref[...] += d * d

    @pl.when(i == steps - 1)
    def _fin():
        out_ref[...] = jnp.sum(acc_ref[...], keepdims=True) * inv_count


def kd_sequence_classification_loss(
        student_logits, teacher_logits=None, *,
        teacher_logits_buf=None, example_indices=None, augmented_indices=None,
        weights=None, temperature=1.0,
        lane_tile_cap=_LANE_TILE_CAP, sublane_tile_cap=_SUBLANE_TILE_CAP):
    """JAX/Pallas equivalent of KDForSequenceClassification.forward."""
    if teacher_logits is None:
        assert example_indices is not None
        if augmented_indices is None:
            augmented_indices = jnp.zeros_like(example_indices)
        # Irregular gather kept in XLA (small compared with the loss itself).
        teacher_logits = teacher_logits_buf[example_indices, augmented_indices]
    assert teacher_logits.shape == student_logits.shape

    B, C = student_logits.shape
    T = float(temperature)
    itemsizes = [jnp.dtype(teacher_logits.dtype).itemsize,
                 jnp.dtype(student_logits.dtype).itemsize]

    cparams = pltpu.CompilerParams(
        dimension_semantics=("parallel", "arbitrary"),
        vmem_limit_bytes=_VMEM_LIMIT)

    use_mse = (weights is None) and (C == 1)

    if use_mse:
        tea = teacher_logits.reshape(1, B)
        stu = student_logits.reshape(1, B)
        TB, n_tiles, nc, steps = _lane_grid(B, sum(itemsizes), lane_tile_cap)
        idx = lambda ci, ii: (0, jnp.minimum(ci * steps + ii, n_tiles - 1))
        spec = pl.BlockSpec((1, TB), idx)
        out = pl.pallas_call(
            functools.partial(_kd_mse_kernel, 1.0 / float(B * C), B, TB),
            out_shape=jax.ShapeDtypeStruct((nc, 1), jnp.float32),
            grid=(nc, steps),
            in_specs=[spec, spec],
            out_specs=pl.BlockSpec((1, 1), lambda ci, ii: (ci, 0)),
            scratch_shapes=[pltpu.VMEM((1, TB), jnp.float32)],
            compiler_params=cparams,
            cost_estimate=pl.CostEstimate(
                flops=3 * B, transcendentals=0,
                bytes_accessed=int(B * sum(itemsizes) + 4 * nc)),
        )(tea, stu)
        return jnp.sum(out)

    has_weights = weights is not None
    # batchmean == per-row weight 1/B, folded into the final scale (no weight stream).
    scale = T * T if has_weights else (T * T) / float(B)
    inv_t = 1.0 / T

    transposed = C < 128   # lane-dense batch axis is the big win for small num_labels
    if transposed:
        tea = jnp.transpose(teacher_logits)          # (C, B): batch on lanes
        stu = jnp.transpose(student_logits)
        col_bytes = C * sum(itemsizes) + (4 if has_weights else 0)
        TB, n_tiles, nc, steps = _lane_grid(B, col_bytes, lane_tile_cap)
        idx = lambda ci, ii: (0, jnp.minimum(ci * steps + ii, n_tiles - 1))
        in_specs = [pl.BlockSpec((C, TB), idx), pl.BlockSpec((C, TB), idx)]
        operands = [tea, stu]
        if has_weights:
            in_specs.append(pl.BlockSpec((1, TB), idx))
            operands.append(weights.reshape(1, B).astype(jnp.float32))
        acc_shape = (1, TB)
        class_axis = 0
    else:
        tea, stu = teacher_logits, student_logits    # (B, C): classes already lane-dense
        row_bytes = C * sum(itemsizes) + (4 if has_weights else 0)
        TB, n_tiles, nc, steps = _sublane_grid(B, row_bytes, itemsizes, sublane_tile_cap)
        idx = lambda ci, ii: (jnp.minimum(ci * steps + ii, n_tiles - 1), 0)
        in_specs = [pl.BlockSpec((TB, C), idx), pl.BlockSpec((TB, C), idx)]
        operands = [tea, stu]
        if has_weights:
            in_specs.append(pl.BlockSpec((TB, 1), idx))
            operands.append(weights.reshape(B, 1).astype(jnp.float32))
        acc_shape = (TB, 1)
        class_axis = 1

    kernel = functools.partial(
        _kd_kl_kernel, inv_t, scale, B, TB, class_axis, has_weights)
    out = pl.pallas_call(
        kernel,
        out_shape=jax.ShapeDtypeStruct((nc, 1), jnp.float32),
        grid=(nc, steps),
        in_specs=in_specs,
        out_specs=pl.BlockSpec((1, 1), lambda ci, ii: (ci, 0)),
        scratch_shapes=[pltpu.VMEM(acc_shape, jnp.float32)],
        compiler_params=cparams,
        cost_estimate=pl.CostEstimate(
            flops=12 * B * C,
            transcendentals=2 * B * C + 4 * B,
            bytes_accessed=int(B * C * sum(itemsizes)
                               + (4 * B if has_weights else 0) + 4 * nc)),
    )(*operands)
    return jnp.sum(out)    # sum per-core partials


if __name__ == "__main__":
    key = jax.random.PRNGKey(0)
    keys = jax.random.split(key, 12)

    # Pure-JAX reference (matches the PyTorch module's math).
    def row_kl_ref(tea, stu, T):
        p_t = jax.nn.softmax(tea / T, axis=-1)
        log_p_s = jax.nn.log_softmax(stu / T, axis=-1)
        return jnp.sum(p_t * (jnp.log(p_t) - log_p_s), axis=-1) * T * T

    # --- small classification shapes ---
    N, A, C = 16, 3, 8            # teacher buffer: [examples, augmentations, labels]
    B = 24                        # student batch
    temperature = 2.0

    teacher_buf = jax.random.normal(keys[0], (N, A, C)).astype(jnp.bfloat16)
    student = jax.random.normal(keys[1], (B, C)).astype(jnp.bfloat16)
    ex_idx = jax.random.randint(keys[2], (B,), 0, N)
    aug_idx = jax.random.randint(keys[3], (B,), 0, A)
    weights = jax.random.uniform(keys[4], (B,), dtype=jnp.float32)

    # Path 1: explicit weights (KLDivLoss reduction='none' + weighted sum).
    loss_w = kd_sequence_classification_loss(
        student, teacher_logits_buf=teacher_buf, example_indices=ex_idx,
        augmented_indices=aug_idx, weights=weights, temperature=temperature)
    jax.block_until_ready(loss_w)

    # Path 2: no weights (batchmean); augmented indices default to 0.
    loss_bm = kd_sequence_classification_loss(
        student, teacher_logits_buf=teacher_buf, example_indices=ex_idx,
        weights=None, temperature=temperature)
    jax.block_until_ready(loss_bm)

    # Path 3: single-logit regression -> MSE.
    t_c1 = jax.random.normal(keys[5], (B, 1), dtype=jnp.float32)
    s_c1 = jax.random.normal(keys[6], (B, 1), dtype=jnp.float32)
    loss_mse = kd_sequence_classification_loss(
        s_c1, teacher_logits=t_c1, weights=None, temperature=temperature)
    jax.block_until_ready(loss_mse)

    # Path 4: multi-tile / ragged-tail / dual-core lane layout (tile forced small).
    B2 = 300
    tea2 = jax.random.normal(keys[7], (B2, C)).astype(jnp.bfloat16)
    stu2 = jax.random.normal(keys[8], (B2, C)).astype(jnp.bfloat16)
    w2 = jax.random.uniform(keys[9], (B2,), dtype=jnp.float32)
    loss_mt = kd_sequence_classification_loss(
        stu2, teacher_logits=tea2, weights=w2, temperature=temperature,
        lane_tile_cap=128)
    jax.block_until_ready(loss_mt)

    # Path 5: wide num_labels -> row layout, ragged sublane tiles, batchmean.
    B3, C3 = 40, 256
    tea3 = jax.random.normal(keys[10], (B3, C3), dtype=jnp.float32)
    stu3 = jax.random.normal(keys[11], (B3, C3), dtype=jnp.float32)
    loss_wide = kd_sequence_classification_loss(
        stu3, teacher_logits=tea3, weights=None, temperature=temperature,
        sublane_tile_cap=16)
    jax.block_until_ready(loss_wide)

    # --- references ---
    tea_w = teacher_buf[ex_idx, aug_idx].astype(jnp.float32)
    tea_bm = teacher_buf[ex_idx, jnp.zeros_like(ex_idx)].astype(jnp.float32)
    stu_f32 = student.astype(jnp.float32)

    ref_w = jnp.sum(row_kl_ref(tea_w, stu_f32, temperature) * weights)
    ref_bm = jnp.mean(row_kl_ref(tea_bm, stu_f32, temperature))
    ref_mse = jnp.mean((t_c1.reshape(-1) - s_c1.reshape(-1)) ** 2)
    ref_mt = jnp.sum(row_kl_ref(tea2.astype(jnp.float32),
                                stu2.astype(jnp.float32), temperature) * w2)
    ref_wide = jnp.mean(row_kl_ref(tea3, stu3, temperature))

    assert jnp.allclose(loss_w, ref_w, rtol=1e-3, atol=1e-5), (loss_w, ref_w)
    assert jnp.allclose(loss_bm, ref_bm, rtol=1e-3, atol=1e-5), (loss_bm, ref_bm)
    assert jnp.allclose(loss_mse, ref_mse, rtol=1e-3, atol=1e-5), (loss_mse, ref_mse)
    assert jnp.allclose(loss_mt, ref_mt, rtol=1e-3, atol=1e-4), (loss_mt, ref_mt)
    assert jnp.allclose(loss_wide, ref_wide, rtol=1e-3, atol=1e-5), (loss_wide, ref_wide)

    print("KERNEL_OK")
</pallas_src>

<mosaic_0001>
module attributes {stable_mosaic.version = 11 : i64} {
  func.func @_kd_kl_kernel(%arg0: i32, %arg1: i32, %arg2: memref<8x24xbf16, #tpu.memory_space<vmem>>, %arg3: memref<8x24xbf16, #tpu.memory_space<vmem>>, %arg4: memref<1x24xf32, #tpu.memory_space<vmem>>, %arg5: memref<1x1xf32, #tpu.memory_space<vmem>>, %arg6: memref<1x24xf32, #tpu.memory_space<vmem>>) attributes {dimension_semantics = [#tpu.dimension_semantics<parallel>, #tpu.dimension_semantics<arbitrary>], iteration_bounds = array<i64: 1, 1>, scalar_prefetch = 0 : i64, scratch_operands = 1 : i64, tpu.core_type = #tpu.core_type<tc>, window_params = [{transform_indices = @transform_0, window_bounds = array<i64: 8, 24>}, {transform_indices = @transform_1, window_bounds = array<i64: 8, 24>}, {transform_indices = @transform_2, window_bounds = array<i64: 1, 24>}, {transform_indices = @transform_3, window_bounds = array<i64: 1, 1>}]} {
    %c0_i32 = arith.constant 0 : i32
    %0 = arith.cmpi eq, %arg1, %c0_i32 : i32
    %1 = arith.extui %0 : i1 to i32
    %c0_i32_0 = arith.constant 0 : i32
    %2 = arith.cmpi ne, %1, %c0_i32_0 : i32
    scf.if %2 {
      %cst_23 = arith.constant 0.000000e+00 : f32
      %62 = vector.broadcast %cst_23 : f32 to vector<1x24xf32>
      %c0_24 = arith.constant 0 : index
      %c0_25 = arith.constant 0 : index
      %63 = vector.load %arg6[%c0_24, %c0_25] : memref<1x24xf32, #tpu.memory_space<vmem>>, vector<1x24xf32>
      tpu.vector_store %arg6[%c0_24, %c0_25], %62 {strides = array<i32>} : memref<1x24xf32, #tpu.memory_space<vmem>>, vector<1x24xf32>,
    } else {
    }
    %c1_i32 = arith.constant 1 : i32
    %3 = arith.muli %arg0, %c1_i32 : i32
    %4 = arith.addi %3, %arg1 : i32
    %c24_i32 = arith.constant 24 : i32
    %5 = arith.muli %4, %c24_i32 : i32
    %6 = tpu.iota {dimensions = array<i32: 1>} : vector<8x24xi32>
    %7 = vector.broadcast %5 : i32 to vector<8x24xi32>
    %8 = arith.addi %7, %6 : vector<8x24xi32>
    %c24_i32_1 = arith.constant 24 : i32
    %9 = vector.broadcast %c24_i32_1 : i32 to vector<8x24xi32>
    %10 = arith.cmpi slt, %8, %9 : vector<8x24xi32>
    %c0 = arith.constant 0 : index
    %c0_2 = arith.constant 0 : index
    %11 = vector.load %arg2[%c0, %c0_2] : memref<8x24xbf16, #tpu.memory_space<vmem>>, vector<8x24xbf16>
    %12 = arith.extf %11 : vector<8x24xbf16> to vector<8x24xf32>
    %cst = arith.constant 0.000000e+00 : f32
    %13 = vector.broadcast %cst : f32 to vector<8x24xf32>
    %14 = arith.select %10, %12, %13 : vector<8x24xi1>, vector<8x24xf32>
    %cst_3 = arith.constant 5.000000e-01 : f32
    %15 = vector.broadcast %cst_3 : f32 to vector<8x24xf32>
    %16 = arith.mulf %14, %15 : vector<8x24xf32>
    %c0_4 = arith.constant 0 : index
    %c0_5 = arith.constant 0 : index
    %17 = vector.load %arg3[%c0_4, %c0_5] : memref<8x24xbf16, #tpu.memory_space<vmem>>, vector<8x24xbf16>
    %18 = arith.extf %17 : vector<8x24xbf16> to vector<8x24xf32>
    %cst_6 = arith.constant 0.000000e+00 : f32
    %19 = vector.broadcast %cst_6 : f32 to vector<8x24xf32>
    %20 = arith.select %10, %18, %19 : vector<8x24xi1>, vector<8x24xf32>
    %cst_7 = arith.constant 5.000000e-01 : f32
    %21 = vector.broadcast %cst_7 : f32 to vector<8x24xf32>
    %22 = arith.mulf %20, %21 : vector<8x24xf32>
    %cst_8 = arith.constant dense<0xFF800000> : vector<24xf32>
    %23 = vector.multi_reduction <maximumf>, %16, %cst_8 [0] : vector<8x24xf32> to vector<24xf32>
    %24 = vector.shape_cast %23 : vector<24xf32> to vector<1x24xf32>
    %25 = vector.broadcast %24 : vector<1x24xf32> to vector<8x24xf32>
    %26 = arith.subf %16, %25 : vector<8x24xf32>
    %27 = math.exp %26 : vector<8x24xf32>
    %cst_9 = arith.constant dense<0.000000e+00> : vector<24xf32>
    %28 = vector.multi_reduction <add>, %27, %cst_9 [0] : vector<8x24xf32> to vector<24xf32>
    %29 = vector.shape_cast %28 : vector<24xf32> to vector<1x24xf32>
    %cst_10 = arith.constant dense<0xFF800000> : vector<24xf32>
    %30 = vector.multi_reduction <maximumf>, %22, %cst_10 [0] : vector<8x24xf32> to vector<24xf32>
    %31 = vector.shape_cast %30 : vector<24xf32> to vector<1x24xf32>
    %32 = vector.broadcast %31 : vector<1x24xf32> to vector<8x24xf32>
    %33 = arith.subf %22, %32 : vector<8x24xf32>
    %34 = math.exp %33 : vector<8x24xf32>
    %cst_11 = arith.constant dense<0.000000e+00> : vector<24xf32>
    %35 = vector.multi_reduction <add>, %34, %cst_11 [0] : vector<8x24xf32> to vector<24xf32>
    %36 = vector.shape_cast %35 : vector<24xf32> to vector<1x24xf32>
    %37 = math.log %36 : vector<1x24xf32>
    %38 = arith.subf %26, %33 : vector<8x24xf32>
    %39 = arith.mulf %27, %38 : vector<8x24xf32>
    %cst_12 = arith.constant dense<0.000000e+00> : vector<24xf32>
    %40 = vector.multi_reduction <add>, %39, %cst_12 [0] : vector<8x24xf32> to vector<24xf32>
    %41 = vector.shape_cast %40 : vector<24xf32> to vector<1x24xf32>
    %42 = tpu.reciprocal %29 : vector<1x24xf32> -> vector<1x24xf32>
    %43 = arith.mulf %41, %42 : vector<1x24xf32>
    %44 = math.log %29 : vector<1x24xf32>
    %45 = arith.subf %43, %44 : vector<1x24xf32>
    %46 = arith.addf %45, %37 : vector<1x24xf32>
    %47 = tpu.iota {dimensions = array<i32: 1>} : vector<1x24xi32>
    %48 = vector.broadcast %5 : i32 to vector<1x24xi32>
    %49 = arith.addi %48, %47 : vector<1x24xi32>
    %c24_i32_13 = arith.constant 24 : i32
    %50 = vector.broadcast %c24_i32_13 : i32 to vector<1x24xi32>
    %51 = arith.cmpi slt, %49, %50 : vector<1x24xi32>
    %c0_14 = arith.constant 0 : index
    %c0_15 = arith.constant 0 : index
    %52 = vector.load %arg4[%c0_14, %c0_15] : memref<1x24xf32, #tpu.memory_space<vmem>>, vector<1x24xf32>
    %cst_16 = arith.constant 0.000000e+00 : f32
    %53 = vector.broadcast %cst_16 : f32 to vector<1x24xf32>
    %54 = arith.select %51, %52, %53 : vector<1x24xi1>, vector<1x24xf32>
    %c0_17 = arith.constant 0 : index
    %c0_18 = arith.constant 0 : index
    %55 = vector.load %arg6[%c0_17, %c0_18] : memref<1x24xf32, #tpu.memory_space<vmem>>, vector<1x24xf32>
    %56 = arith.mulf %46, %54 : vector<1x24xf32>
    %57 = arith.addf %55, %56 : vector<1x24xf32>
    %c0_19 = arith.constant 0 : index
    %c0_20 = arith.constant 0 : index
    %58 = vector.load %arg6[%c0_19, %c0_20] : memref<1x24xf32, #tpu.memory_space<vmem>>, vector<1x24xf32>
    tpu.vector_store %arg6[%c0_19, %c0_20], %57 {strides = array<i32>} : memref<1x24xf32, #tpu.memory_space<vmem>>, vector<1x24xf32>,
    %c0_i32_21 = arith.constant 0 : i32
    %59 = arith.cmpi eq, %arg1, %c0_i32_21 : i32
    %60 = arith.extui %59 : i1 to i32
    %c0_i32_22 = arith.constant 0 : i32
    %61 = arith.cmpi ne, %60, %c0_i32_22 : i32
    scf.if %61 {
      %c0_23 = arith.constant 0 : index
      %c0_24 = arith.constant 0 : index
      %62 = vector.load %arg6[%c0_23, %c0_24] : memref<1x24xf32, #tpu.memory_space<vmem>>, vector<1x24xf32>
      %63 = vector.shape_cast %62 : vector<1x24xf32> to vector<1x1x24xf32>
      %cst_25 = arith.constant dense<0.000000e+00> : vector<1xf32>
      %64 = vector.multi_reduction <add>, %63, %cst_25 [1, 2] : vector<1x1x24xf32> to vector<1xf32>
      %65 = vector.shape_cast %64 : vector<1xf32> to vector<1x1x1xf32>
      %66 = vector.extract %65[0, 0, 0] : f32 from vector<1x1x1xf32>
      %67 = vector.broadcast %66 : f32 to vector<1x1xf32>
      %cst_26 = arith.constant 4.000000e+00 : f32
      %68 = vector.broadcast %cst_26 : f32 to vector<1x1xf32>
      %69 = arith.mulf %67, %68 : vector<1x1xf32>
      %c0_27 = arith.constant 0 : index
      %c0_28 = arith.constant 0 : index
      %70 = vector.load %arg5[%c0_27, %c0_28] : memref<1x1xf32, #tpu.memory_space<vmem>>, vector<1x1xf32>
      tpu.vector_store %arg5[%c0_27, %c0_28], %69 {strides = array<i32>} : memref<1x1xf32, #tpu.memory_space<vmem>>, vector<1x1xf32>,
    } else {
    }
    return
  }
  func.func @transform_0(%arg0: i32, %arg1: i32) -> (i32, i32) {
    %c1_i32 = arith.constant 1 : i32
    %0 = arith.muli %arg0, %c1_i32 : i32
    %1 = arith.addi %0, %arg1 : i32
    %c0_i32 = arith.constant 0 : i32
    %2 = arith.minsi %1, %c0_i32 : i32
    %c0_i32_0 = arith.constant 0 : i32
    %c0_i32_1 = arith.constant 0 : i32
    return %c0_i32_0, %2 : i32, i32
  }
  func.func @transform_1(%arg0: i32, %arg1: i32) -> (i32, i32) {
    %c1_i32 = arith.constant 1 : i32
    %0 = arith.muli %arg0, %c1_i32 : i32
    %1 = arith.addi %0, %arg1 : i32
    %c0_i32 = arith.constant 0 : i32
    %2 = arith.minsi %1, %c0_i32 : i32
    %c0_i32_0 = arith.constant 0 : i32
    %c0_i32_1 = arith.constant 0 : i32
    return %c0_i32_0, %2 : i32, i32
  }
  func.func @transform_2(%arg0: i32, %arg1: i32) -> (i32, i32) {
    %c1_i32 = arith.constant 1 : i32
    %0 = arith.muli %arg0, %c1_i32 : i32
    %1 = arith.addi %0, %arg1 : i32
    %c0_i32 = arith.constant 0 : i32
    %2 = arith.minsi %1, %c0_i32 : i32
    %c0_i32_0 = arith.constant 0 : i32
    %c0_i32_1 = arith.constant 0 : i32
    return %c0_i32_0, %2 : i32, i32
  }
  func.func @transform_3(%arg0: i32, %arg1: i32) -> (i32, i32) {
    %c0_i32 = arith.constant 0 : i32
    %c0_i32_0 = arith.constant 0 : i32
    return %arg0, %c0_i32 : i32, i32
  }
}

</mosaic_0001>

<bundles_post_ra>
// kernel: tpu_custom_call.1
= control target key start
LH: loop header
LB: loop body
LE: loop exit
PB: predicated region body
PF: predicated region fallthrough
CT: control target
= control target key end

     0   :  { %8 = vsyncpa [#allocation4], 0  ;;  %s335_s0 = inlined_call_operand.hbm [shape: bf16[8,24], index: 0, kind: input, shape index: {}]   ;;  %s336_s1 = inlined_call_operand.hbm [shape: bf16[8,24], index: 1, kind: input, shape index: {}]   ;;  %s337_s2 = inlined_call_operand.vmem [shape: f32[1,24], index: 2, kind: input, shape index: {}]   ;;  %s338_s3 = inlined_call_operand.hbm [shape: f32[1,1], index: 3, kind: output, shape index: {}]  }
   0x1   :  { %9 = vsyncpa [#allocation7], 0 }
   0x2   :  { %10 = vsyncpa [#allocation5], 0  ;;  %s282_s12 = smov [#allocation3]   ;;  %s283_s14 = smov [#allocation6]  }
   0x3   :  { %s22_s13 = sshll.u32 %s282_s12, 4  ;;  %s37_s15 = sshll.u32 %s283_s14, 4  ;;  %s23_s13 = int_to_ptr.vmem [resolvable:$true] %s22_s13  ;;  %s38_s15 = int_to_ptr.vmem [resolvable:$true] %s37_s15 }
   0x4   :  { %s224_s16 = scalar_lea.vmem %s23_s13, 64  ;;  %p229_p1 = scmp.lt.s32.totalorder %s23_s13, %s23_s13 }
   0x5   :  { %p225_p0 = scmp.ne.s32.totalorder %s23_s13, %s224_s16  ;;  %p230_p2 = scmp.lt.s32.totalorder %s224_s16, %s224_s16 }
   0x7   :  { %p231_p3 = por %p230_p2, %p229_p1 }
   0x9   :  { %p232_p4 = pnand %p231_p3, %p225_p0 }
   0xb   :  { %235 = shalt.err (!%p232_p4)
}
   0xc   :  { %25 = dma.hbm_to_vmem [thread:$0]  %s335_s0, 64, %s23_s13, [#allocation4]  }
   0xd   :  { %s244_s19 = scalar_lea.vmem %s38_s15, 64  ;;  %p249_p6 = scmp.lt.s32.totalorder %s38_s15, %s38_s15 }
   0xe   :  { %p245_p5 = scmp.ne.s32.totalorder %s38_s15, %s244_s19  ;;  %p250_p7 = scmp.lt.s32.totalorder %s244_s19, %s244_s19 }
  0x10   :  { %p251_p8 = por %p250_p7, %p249_p6 }
  0x12   :  { %p252_p9 = pnand %p251_p8, %p245_p5 }
  0x14   :  { %255 = shalt.err (!%p252_p9)
}
  0x15   :  { %40 = dma.hbm_to_vmem [thread:$0]  %s336_s1, 64, %s38_s15, [#allocation7]  }
  0x16   :  { %276 = dma.done.wait [#allocation4], 64  }
  0x17   :  { %277 = vsyncadd [#allocation4], 4294967232 }
  0x18   :  { %278 = dma.done.wait [#allocation7], 64  }
  0x19   :  { %279 = vsyncadd [#allocation7], 4294967232  ;;  %vm83_vm0 = vcmask 188416   ;;  %v87_v0 = vlaneseq  ;;  %v284_v1 = vmov 0.0   ;;  %v92_v3 = vld [vmem:[#allocation3] sm:$0xf] }
  0x1a   :  { %84 = vst.msk [vmem:[#allocation2] sm:$0x1] %vm83_vm0, %v284_v1  ;;  %v96_v4 = vld [vmem:[#allocation6] sm:$0xf]  ;;  %v93_v5 = vunpack.c.l.bf16 %v92_v3  ;;  %vm100_vm2 = vcmask 195584   ;;  %vm175_vm3 = vcmask 0  }
  0x1b   :  { %v313_v2 = vand.u32 127, %v87_v0  ;;  %v97_v6 = vunpack.c.l.bf16 %v96_v4  ;;  %v152_v60 = vld [vmem:[%s337_s2] sm:$0x1]  ;;  %s285_s2 = smov [#allocation8]  }
  0x1c   :  { %s183_s22 = sshll.u32 %s285_s2, 4  ;;  %s184_s22 = int_to_ptr.vmem [resolvable:$true] %s183_s22 }
  0x1d   :  { %vm91_vm1 = vcmp.lt.s32.totalorder %v313_v2, 24  ;;  %s256_s24 = scalar_lea.vmem %s184_s22, 16  ;;  %s260_s25 = scalar_lea.vmem %s184_s22, 32 }
  0x1e   :  { %v94_v7 = vsel %vm91_vm1, %v93_v5, 0.0  ;;  %v98_v8 = vsel %vm91_vm1, %v97_v6, 0.0  ;;  %v153_v62 = vsel %vm91_vm1, %v152_v60, 0.0  ;;  %p257_p10 = scmp.ne.s32.totalorder %s184_s22, %s256_s24  ;;  %p261_p11 = scmp.lt.s32.totalorder %s184_s22, %s184_s22 }
  0x1f   :  { %v95_v9 = vmul.f32 0.5, %v94_v7  ;;  %v99_v10 = vmul.f32 0.5, %v98_v8  ;;  %p262_p12 = scmp.lt.s32.totalorder %s260_s25, %s256_s24 }
  0x21   :  { %v101_v11 = vsel %vm100_vm2, %v95_v9, -inf  ;;  %v118_v12 = vsel %vm100_vm2, %v99_v10, -inf  ;;  %v154_v0 = vld [vmem:[#allocation2] sm:$0x1]  ;;  %p263_p13 = por %p262_p12, %p261_p11 }
  0x22   :  { %v102_v13 = vrot.slane %v101_v11, 4  ;;  %v119_v14 = vrot.slane %v118_v12, 4 }
  0x23   :  { %p264_p0 = pnand %p263_p13, %p257_p10 }
  0x24   :  { %v103_v15 = vmax.f32 %v101_v11, %v102_v13  ;;  %v120_v16 = vmax.f32 %v118_v12, %v119_v14 }
  0x26   :  { %v104_v17 = vrot.slane %v103_v15, 2  ;;  %v121_v18 = vrot.slane %v120_v16, 2 }
  0x28   :  { %v105_v19 = vmax.f32 %v103_v15, %v104_v17  ;;  %v122_v20 = vmax.f32 %v120_v16, %v121_v18 }
  0x2a   :  { %v106_v21 = vrot.slane %v105_v19, 1  ;;  %v123_v22 = vrot.slane %v122_v20, 1 }
  0x2c   :  { %v107_v23 = vmax.f32 %v105_v19, %v106_v21  ;;  %v124_v24 = vmax.f32 %v122_v20, %v123_v22 }
  0x2e   :  { %v108_v25 = vsub.f32 %v95_v9, %v107_v23  ;;  %v125_v26 = vsub.f32 %v99_v10, %v124_v24 }
  0x30   :  { %v109_v27 = vmul.f32 1.442695, %v108_v25  ;;  %v126_v28 = vmul.f32 1.442695, %v125_v26  ;;  %v137_v29 = vsub.f32 %v108_v25, %v125_v26 }
  0x32   :  { %206 = vpow2.f32 %v109_v27 }
  0x33   :  { %208 = vpow2.f32 %v126_v28 }
  0x3f   :  { %v207_v30 = vpop.eup %206 }
  0x40   :  { %v209_v31 = vpop.eup %208  ;;  %v111_v32 = vsel %vm100_vm2, %v207_v30, 0.0  ;;  %v138_v33 = vmul.f32 %v207_v30, %v137_v29 }
  0x41   :  { %v112_v34 = vrot.slane %v111_v32, 4  ;;  %v128_v35 = vsel %vm100_vm2, %v209_v31, 0.0 }
  0x42   :  { %v129_v36 = vrot.slane %v128_v35, 4  ;;  %v139_v37 = vsel %vm100_vm2, %v138_v33, 0.0 }
  0x43   :  { %v113_v38 = vadd.f32 %v112_v34, %v111_v32  ;;  %v140_v39 = vrot.slane %v139_v37, 4 }
  0x44   :  { %v130_v40 = vadd.f32 %v129_v36, %v128_v35 }
  0x45   :  { %v114_v41 = vrot.slane %v113_v38, 2  ;;  %v141_v44 = vadd.f32 %v140_v39, %v139_v37 }
  0x46   :  { %v131_v42 = vrot.slane %v130_v40, 2 }
  0x47   :  { %v115_v43 = vadd.f32 %v114_v41, %v113_v38  ;;  %v142_v49 = vrot.slane %v141_v44, 2 }
  0x48   :  { %v132_v45 = vadd.f32 %v131_v42, %v130_v40 }
  0x49   :  { %v116_v46 = vrot.slane %v115_v43, 1  ;;  %v143_v51 = vadd.f32 %v142_v49, %v141_v44 }
  0x4a   :  { %v133_v47 = vrot.slane %v132_v45, 1 }
  0x4b   :  { %v117_v48 = vadd.f32 %v116_v46, %v115_v43  ;;  %v144_v52 = vrot.slane %v143_v51, 1 }
  0x4c   :  { %v134_v50 = vadd.f32 %v133_v47, %v132_v45 }
  0x4d   :  { %210 = vrcp.f32 %v117_v48  ;;  %v145_v53 = vadd.f32 %v144_v52, %v143_v51 }
  0x4e   :  { %212 = vlog2.f32 %v134_v50 }
  0x4f   :  { %214 = vlog2.f32 %v117_v48 }
  0x5a   :  { %v211_v54 = vpop.eup %210 }
  0x5b   :  { %v213_v55 = vpop.eup %212  ;;  %v147_v56 = vmul.f32 %v211_v54, %v145_v53 }
  0x5c   :  { %v215_v57 = vpop.eup %214  ;;  %v136_v58 = vmul.f32 0.6931472, %v213_v55 }
  0x5d   :  { %v149_v59 = vmul.f32 0.6931472, %v215_v57 }
  0x5f   :  { %v150_v61 = vsub.f32 %v147_v56, %v149_v59 }
  0x61   :  { %v151_v63 = vadd.f32 %v150_v61, %v136_v58 }
  0x63   :  { %v155_v1 = vmul.f32 %v153_v62, %v151_v63 }
  0x65   :  { %v156_v3 = vadd.f32 %v155_v1, %v154_v0 }
  0x67   :  { %158 = vst.msk [vmem:[#allocation2] sm:$0x1] %vm83_vm0, %v156_v3 }
  0x6e   :  { %v162_v4 = vld [vmem:[#allocation2] sm:$0x1] }
  0x6f   :  { %v163_v5 = vsel %vm83_vm0, %v162_v4, 0.0 }
  0x70   :  { %164 = vadd.xlane.f32.xlu0 %v163_v5 }
  0xf9   :  { %v165_v6 = vpop.xlane.xlu0 %164 }
  0xfa   :  { %v166_v7 = vrot.slane %v165_v6, 4 }
  0xfc   :  { %v167_v8 = vadd.f32 %v166_v7, %v165_v6 }
  0xfe   :  { %v168_v9 = vrot.slane %v167_v8, 2 }
 0x100   :  { %v169_v10 = vadd.f32 %v168_v9, %v167_v8 }
 0x102   :  { %v170_v11 = vrot.slane %v169_v10, 1 }
 0x104   :  { %v171_v12 = vadd.f32 %v170_v11, %v169_v10 }
 0x106   :  { %200 = vpush %v171_v12 }
 0x137   :  { %s201_s23 = spop %200 }
 0x138   :  { %v173_v2 = vstv %s201_s23 }
 0x139   :  { %v174_v13 = vmul.f32 4.0, %v173_v2 }
 0x13b   :  { %176 = vst.msk [vmem:[#allocation8] sm:$0x1] %vm175_vm3, %v174_v13 }
 0x13c   :  { %267 = shalt.err (!%p264_p0)
}
 0x13d   :  { %186 = dma.vmem_to_hbm [thread:$0]  %s184_s22, 16, %s338_s3, [#allocation5]  }
 0x13e   :  { %280 = dma.done.wait [#allocation5], 16  }
 0x13f   :  { %281 = vsyncadd [#allocation5], 4294967280 }
 0x140   :  { %190 = vsyncpa [#allocation4], 1 }
 0x141   :  { %191 = vsyncpa [#allocation7], 1 }
 0x142   :  { %192 = vsyncpa [#allocation5], 1 }

</bundles_post_ra>
